<compile_context>
chip_gen: v5e
topology: v5e:2x2
jax: 0.10.0
libtpu: 0.0.40
codegen_flags: <defaults>
</compile_context>

<pallas_src>
import jax
import jax.numpy as jnp
from jax.experimental import pallas as pl
from jax.experimental.pallas import tpu as pltpu

EPS = 1e-5                      # BatchNorm1d default eps
NEG_SLOPE = 0.2                 # LeakyReLU slope
VMEM_LIMIT = 32 << 20           # raised scoped-VMEM budget (safe on v5e/v6e/v7x)
TILE_TARGET_BYTES = 2 << 20     # ~2 MiB per block -> comfortable with double-buffering
MAX_TM = 1024                   # lane-tile cap (>=512 per perf review)


def _round_up(x, m):
    return (x + m - 1) // m * m


def _choose_tm(m, bytes_per_col):
    """Pick (lane-tile TM, padded Mp).

    Largest multiple of 128 (capped at MAX_TM) whose per-block footprint stays
    under TILE_TARGET_BYTES; M is padded UP to a multiple of that tile, so we
    never silently fall back to 128-wide tiles."""
    cap = (TILE_TARGET_BYTES // max(bytes_per_col, 1)) // 128 * 128
    cap = max(128, min(MAX_TM, cap))
    mp = _round_up(m, 128)
    if mp <= cap:
        return mp, mp
    return cap, _round_up(m, cap)


# ----------------------------- Pallas kernels ------------------------------ #

def _linear_bias_kernel(x_ref, w_ref, b_ref, o_ref):
    # (Cp, Kp)bf16 @ (Kp, TM)bf16 -> f32 acc, + (Cp, 1) bias, stored bf16.
    y = jnp.dot(w_ref[...], x_ref[...], preferred_element_type=jnp.float32)
    o_ref[...] = (y + b_ref[...]).astype(o_ref.dtype)


def _conv_stats_kernel(x_ref, w_ref, y_ref, sum_ref, sq_ref):
    # Pass 1: 1-ring conv matmul tile + per-channel sum / sum-of-squares
    # accumulation (padded rows/columns of the slab/weight are zero, so they
    # contribute nothing).  Conv bias omitted: cancelled by BN mean subtraction.
    y = jnp.dot(w_ref[...], x_ref[...], preferred_element_type=jnp.float32)  # (Cp, TM)

    @pl.when(pl.program_id(0) == 0)
    def _():
        sum_ref[...] = jnp.zeros_like(sum_ref)
        sq_ref[...] = jnp.zeros_like(sq_ref)

    sum_ref[...] += jnp.sum(y, axis=1, keepdims=True)
    sq_ref[...] += jnp.sum(y * y, axis=1, keepdims=True)
    y_ref[...] = y


def _bn_lrelu_kernel(y_ref, scale_ref, shift_ref, o_ref):
    # Pass 2: per-channel affine (single FMA) + LeakyReLU(0.2).
    z = y_ref[...] * scale_ref[...] + shift_ref[...]
    o_ref[...] = jnp.where(z >= 0, z, NEG_SLOPE * z).astype(o_ref.dtype)


# ------------------------------ kernel wrappers ----------------------------- #

def upconv_linear(x_cf, w_cf, b_col, tm):
    """x_cf: (Kp, Mp) bf16, w_cf: (Cp, Kp) bf16, b_col: (Cp, 1) f32 -> (Cp, Mp) bf16."""
    kp, mp = x_cf.shape
    cp = w_cf.shape[0]
    return pl.pallas_call(
        _linear_bias_kernel,
        out_shape=jax.ShapeDtypeStruct((cp, mp), jnp.bfloat16),
        grid_spec=pltpu.PrefetchScalarGridSpec(
            num_scalar_prefetch=0,
            grid=(mp // tm,),
            in_specs=[pl.BlockSpec((kp, tm), lambda i: (0, i)),
                      pl.BlockSpec((cp, kp), lambda i: (0, 0)),
                      pl.BlockSpec((cp, 1), lambda i: (0, 0))],
            out_specs=pl.BlockSpec((cp, tm), lambda i: (0, i)),
        ),
        compiler_params=pltpu.CompilerParams(
            dimension_semantics=("parallel",), vmem_limit_bytes=VMEM_LIMIT),
    )(x_cf, w_cf, b_col)


def conv_matmul_stats(slab, w_cf, tm):
    """Pass 1: (Cp, Mp) f32 pre-BN activations + per-channel sum / sum-of-squares."""
    kp, mp = slab.shape
    cp = w_cf.shape[0]
    return pl.pallas_call(
        _conv_stats_kernel,
        out_shape=(jax.ShapeDtypeStruct((cp, mp), jnp.float32),
                   jax.ShapeDtypeStruct((cp, 1), jnp.float32),
                   jax.ShapeDtypeStruct((cp, 1), jnp.float32)),
        grid_spec=pltpu.PrefetchScalarGridSpec(
            num_scalar_prefetch=0,
            grid=(mp // tm,),
            in_specs=[pl.BlockSpec((kp, tm), lambda i: (0, i)),
                      pl.BlockSpec((cp, kp), lambda i: (0, 0))],
            out_specs=[pl.BlockSpec((cp, tm), lambda i: (0, i)),
                       pl.BlockSpec((cp, 1), lambda i: (0, 0)),
                       pl.BlockSpec((cp, 1), lambda i: (0, 0))],
        ),
        compiler_params=pltpu.CompilerParams(
            dimension_semantics=("arbitrary",),   # stats accumulate across M tiles
            vmem_limit_bytes=VMEM_LIMIT),
    )(slab, w_cf)


def bn_lrelu(y, scale_col, shift_col, tm, out_dtype):
    """Pass 2: z = y*scale + shift, LeakyReLU; M-tiled, megacore-parallel."""
    cp, mp = y.shape
    return pl.pallas_call(
        _bn_lrelu_kernel,
        out_shape=jax.ShapeDtypeStruct((cp, mp), out_dtype),
        grid_spec=pltpu.PrefetchScalarGridSpec(
            num_scalar_prefetch=0,
            grid=(mp // tm,),
            in_specs=[pl.BlockSpec((cp, tm), lambda i: (0, i)),
                      pl.BlockSpec((cp, 1), lambda i: (0, 0)),
                      pl.BlockSpec((cp, 1), lambda i: (0, 0))],
            out_specs=pl.BlockSpec((cp, tm), lambda i: (0, i)),
        ),
        compiler_params=pltpu.CompilerParams(
            dimension_semantics=("parallel",), vmem_limit_bytes=VMEM_LIMIT),
    )(y, scale_col, shift_col)


# ------------------------- layout / parameter helpers ----------------------- #

def _prep_weight_cf(w):
    """(K, C) f32 weight (x @ w convention) -> (round8(C), round16(K)) bf16,
    transposed to channels-first and zero-padded."""
    k, c = w.shape
    wt = jnp.transpose(w)
    wt = jnp.pad(wt, ((0, _round_up(c, 8) - c), (0, _round_up(k, 16) - k)))
    return wt.astype(jnp.bfloat16)


def _pad_col(v, rows, fill=0.0):
    c = v.shape[0]
    return jnp.pad(v.astype(jnp.float32), (0, rows - c),
                   constant_values=fill).reshape(rows, 1)


def _pad_vec(v, rows, fill=0.0):
    return jnp.pad(v.astype(jnp.float32), (0, rows - v.shape[0]),
                   constant_values=fill)


def _ring_slab_cf(h_cbn, neigh_orders, k_pad, m_pad):
    """1-ring gather, channels-first: (C, B, Nn) -> (k_pad, m_pad) bf16 slab.
    Row order r*C + c (ring-major, matching Linear(7C, out)), column b*Nn + n.
    TODO(synk): fold this gather into the conv kernel (scalar-prefetch row
    gather) to avoid materializing the 7x-expanded slab in HBM."""
    c, b, nn = h_cbn.shape
    g = jnp.take(h_cbn, neigh_orders, axis=2).reshape(c, b, nn, 7)
    g = jnp.transpose(g, (3, 0, 1, 2)).reshape(7 * c, b * nn).astype(jnp.bfloat16)
    return jnp.pad(g, ((0, k_pad - 7 * c), (0, m_pad - b * nn)))


# ------------------------------ Pallas forward ------------------------------ #

def _pallas_forward(params, x1, x2, neigh_orders, down_idx):
    B, in_ch, N = x1.shape
    C = params["conv1_w"].shape[1]          # out_ch
    new_nodes = 4 * N - 6

    # ---- parameter prep (tiny; folded by jit) ----
    w_up = _prep_weight_cf(params["up_w"])                          # (round8(7C), round16(in_ch))
    b_up = _pad_col(params["up_b"], w_up.shape[0])
    w1 = _prep_weight_cf(params["conv1_w"])                         # (Cp, round16(7*in_ch))
    w2 = _prep_weight_cf(params["conv2_w"])                         # (Cp, round16(7*C))
    g1 = _pad_vec(params["bn1_g"], w1.shape[0])                     # pad 0 -> padded rows end up 0
    bt1 = _pad_vec(params["bn1_b"], w1.shape[0])
    g2 = _pad_vec(params["bn2_g"], w2.shape[0])
    bt2 = _pad_vec(params["bn2_b"], w2.shape[0])

    # ---- upconv_layer_batch: Linear(in_ch -> 7*out_ch), lane-dense bf16 ----
    m1 = B * N
    kin, cup = w_up.shape[1], w_up.shape[0]
    tm1, mp1 = _choose_tm(m1, 2 * kin + 2 * cup)
    x1cf = jnp.transpose(x1, (1, 0, 2)).reshape(in_ch, m1)
    x1cf = jnp.pad(x1cf, ((0, kin - in_ch), (0, mp1 - m1))).astype(jnp.bfloat16)
    y = upconv_linear(x1cf, w_up, b_up, tm1)[:7 * C, :m1]           # (7C, B*N) bf16
    y3 = y.reshape(7 * C, B, N)

    # ---- scatter to the refined mesh (channels-first glue) ----
    # top vertices: upconv_top_index is deterministically i*7+6 (Get_upconv_index)
    # -> static ROW slice (feature f = 6*C + c), no gather, no transpose.
    top_cf = y3[6 * C:7 * C]                                        # (C, B, N)

    # edge vertices: faithful torch `x[:, down_idx].view(B,-1,C,2).mean(3)`
    # expressed in channels-first coordinates:
    #   out[m, c', t] <- y3[(p%7)*C + (2c'+t)%C, b, p//7], p = down_idx[2m + (2c'+t)//C]
    K = new_nodes - N
    i = jnp.arange(2 * C, dtype=jnp.int32)                          # i = 2*c' + t
    j_idx = 2 * jnp.arange(K, dtype=jnp.int32)[:, None] + (i // C)[None, :]   # (K, 2C)
    p = down_idx[j_idx]                                             # (K, 2C), values n*7+r
    row = (p % 7) * C + (i % C)[None, :]                            # (K, 2C)
    vals = y3[row, :, p // 7]                                       # (K, 2C, B)
    down_cf = jnp.mean(vals.astype(jnp.float32).reshape(K, C, 2, B), axis=2)
    down_cf = jnp.transpose(down_cf, (1, 2, 0)).astype(jnp.bfloat16)  # (C, B, K)

    x1_up = jnp.concatenate([top_cf, down_cf], axis=2)              # (C, B, new) bf16
    x2_cf = jnp.transpose(x2, (1, 0, 2)).astype(jnp.bfloat16)       # (in_ch-C, B, new)
    x_cf = jnp.concatenate([x1_up, x2_cf], axis=0)                  # (in_ch, B, new) bf16

    # ---- double_conv: 2 x (1-ring conv -> BN -> LeakyReLU), two-pass tiled ----
    def conv_block(h_cbn, w_cf, g_vec, beta_vec, out_dtype):
        c_in, bb, nn = h_cbn.shape
        m = bb * nn
        cp, kp = w_cf.shape
        tm, mp = _choose_tm(m, 2 * kp + 4 * cp)
        slab = _ring_slab_cf(h_cbn, neigh_orders, kp, mp)            # (kp, mp) bf16

        y_act, s1, s2 = conv_matmul_stats(slab, w_cf, tm)            # f32 acts + stats
        inv_m = 1.0 / m
        mu = s1[:, 0] * inv_m
        var = jnp.maximum(s2[:, 0] * inv_m - mu * mu, 0.0)           # clamp cancellation
        scale = g_vec * jax.lax.rsqrt(var + EPS)
        shift = beta_vec - mu * scale
        o = bn_lrelu(y_act, scale[:, None], shift[:, None], tm, out_dtype)
        # Padded lanes/rows hold affine junk after BN -> slice before any reuse.
        return o[:C, :m].reshape(C, bb, nn)

    h = conv_block(x_cf, w1, g1, bt1, jnp.bfloat16)                  # re-gathered -> bf16
    h = conv_block(h, w2, g2, bt2, jnp.float32)                      # module output -> f32
    return jnp.transpose(h, (1, 0, 2))                               # (B, out_ch, 4N-6)


# --------------------- faithful pure-JAX (f32) reference -------------------- #

def _ref_forward(params, x1, x2, neigh_orders, top_idx, down_idx):
    B, in_ch, N = x1.shape
    out_ch = params["conv1_w"].shape[1]
    new_nodes = 4 * N - 6

    xt = jnp.transpose(x1, (0, 2, 1)).reshape(B * N, in_ch)
    y = xt @ params["up_w"] + params["up_b"][None, :]
    y = y.reshape(B, N * 7, out_ch)
    top = jnp.take(y, top_idx, axis=1)
    down = jnp.take(y, down_idx, axis=1)
    down = jnp.mean(down.reshape(B, new_nodes - N, out_ch, 2), axis=3)
    x1_up = jnp.transpose(jnp.concatenate([top, down], axis=1), (0, 2, 1))
    x = jnp.concatenate([x1_up, x2], axis=1)

    def block(h, w, b, g, beta):
        bc, c, nn = h.shape
        ht = jnp.transpose(h, (0, 2, 1))
        m = jnp.take(ht, neigh_orders, axis=1).reshape(bc * nn, 7 * c)
        yy = m @ w + b[None, :]
        mu = jnp.mean(yy, axis=0, keepdims=True)
        var = jnp.mean(jnp.square(yy - mu), axis=0, keepdims=True)
        z = g[None, :] * (yy - mu) * jax.lax.rsqrt(var + EPS) + beta[None, :]
        z = jnp.where(z >= 0, z, NEG_SLOPE * z)
        return jnp.transpose(z.reshape(bc, nn, -1), (0, 2, 1))

    h = block(x, params["conv1_w"], params["conv1_b"], params["bn1_g"], params["bn1_b"])
    h = block(h, params["conv2_w"], params["conv2_b"], params["bn2_g"], params["bn2_b"])
    return h


pallas_forward = jax.jit(_pallas_forward)
ref_forward = jax.jit(_ref_forward)


# ----------------------------------- main ----------------------------------- #

if __name__ == "__main__":
    key = jax.random.PRNGKey(0)
    B, in_ch, out_ch, N = 2, 8, 4, 42
    new_nodes = 4 * N - 6  # 162 (icosahedral refinement)

    ks = jax.random.split(key, 16)

    def u(k, shape, fan_in):
        lim = 1.0 / (fan_in ** 0.5)
        return jax.random.uniform(k, shape, jnp.float32, -lim, lim)

    params = {
        "up_w": u(ks[0], (in_ch, 7 * out_ch), in_ch),          # Linear(in_ch, 7*out_ch)
        "up_b": u(ks[1], (7 * out_ch,), in_ch),
        "conv1_w": u(ks[2], (7 * in_ch, out_ch), 7 * in_ch),   # Linear(7*in_ch, out_ch)
        "conv1_b": u(ks[3], (out_ch,), 7 * in_ch),             # used only by the f32 ref
        "bn1_g": 1.0 + 0.1 * jax.random.normal(ks[4], (out_ch,), jnp.float32),
        "bn1_b": 0.1 * jax.random.normal(ks[5], (out_ch,), jnp.float32),
        "conv2_w": u(ks[6], (7 * out_ch, out_ch), 7 * out_ch),
        "conv2_b": u(ks[7], (out_ch,), 7 * out_ch),            # used only by the f32 ref
        "bn2_g": 1.0 + 0.1 * jax.random.normal(ks[8], (out_ch,), jnp.float32),
        "bn2_b": 0.1 * jax.random.normal(ks[9], (out_ch,), jnp.float32),
    }

    # inputs: x1 coarse-level features, x2 fine-level skip features
    x1 = jax.random.normal(ks[10], (B, in_ch, N), jnp.float32)
    x2 = jax.random.normal(ks[11], (B, in_ch - out_ch, new_nodes), jnp.float32)

    # synthetic (deterministic) index tables with the real shapes/ranges
    top_idx = jnp.arange(N, dtype=jnp.int32) * 7 + 6                          # i*7+6 (Get_upconv_index)
    down_idx = jax.random.randint(ks[12], (2 * (new_nodes - N),), 0, N * 7,
                                  dtype=jnp.int32)                            # (2*(3N-6),)
    neigh = jax.random.randint(ks[13], (new_nodes, 6), 0, new_nodes, dtype=jnp.int32)
    neigh_orders = jnp.concatenate(
        [neigh, jnp.arange(new_nodes, dtype=jnp.int32)[:, None]], axis=1).reshape(-1)  # (7*new,)

    out = jax.block_until_ready(pallas_forward(params, x1, x2, neigh_orders, down_idx))
    ref = jax.block_until_ready(ref_forward(params, x1, x2, neigh_orders, top_idx, down_idx))

    assert out.shape == (B, out_ch, new_nodes), out.shape
    # bf16 MXU inputs / bf16 intermediates vs. pure-f32 reference -> tolerance 5e-2.
    err = float(jnp.max(jnp.abs(out - ref)))
    assert jnp.allclose(out, ref, atol=5e-2, rtol=5e-2), err
    print("KERNEL_OK")
</pallas_src>

<mosaic_0001>
module attributes {stable_mosaic.version = 11 : i64} {
  func.func @_linear_bias_kernel(%arg0: i32, %arg1: memref<16x128xbf16, #tpu.memory_space<vmem>>, %arg2: memref<32x16xbf16, #tpu.memory_space<vmem>>, %arg3: memref<32x1xf32, #tpu.memory_space<vmem>>, %arg4: memref<32x128xbf16, #tpu.memory_space<vmem>>) attributes {dimension_semantics = [#tpu.dimension_semantics<parallel>], iteration_bounds = array<i64: 1>, scalar_prefetch = 0 : i64, scratch_operands = 0 : i64, tpu.core_type = #tpu.core_type<tc>, window_params = [{transform_indices = @transform_0, window_bounds = array<i64: 16, 128>}, {pipeline_mode = #tpu.pipeline_mode<synchronous>, transform_indices = @transform_1, window_bounds = array<i64: 32, 16>}, {pipeline_mode = #tpu.pipeline_mode<synchronous>, transform_indices = @transform_2, window_bounds = array<i64: 32, 1>}, {transform_indices = @transform_3, window_bounds = array<i64: 32, 128>}]} {
    %c0 = arith.constant 0 : index
    %c0_0 = arith.constant 0 : index
    %0 = vector.load %arg2[%c0, %c0_0] : memref<32x16xbf16, #tpu.memory_space<vmem>>, vector<32x16xbf16>
    %c0_1 = arith.constant 0 : index
    %c0_2 = arith.constant 0 : index
    %1 = vector.load %arg1[%c0_1, %c0_2] : memref<16x128xbf16, #tpu.memory_space<vmem>>, vector<16x128xbf16>
    %cst = arith.constant dense<0.000000e+00> : vector<32x128xf32>
    %2 = tpu.matmul %0, %1, %cst {dimension_numbers = #tpu.dot_dimension_numbers<[1], [0], [0], [1], [0, 0, 1, 1], [], []>} : vector<32x16xbf16>, vector<16x128xbf16>, vector<32x128xf32> -> vector<32x128xf32>
    %c0_3 = arith.constant 0 : index
    %c0_4 = arith.constant 0 : index
    %3 = vector.load %arg3[%c0_3, %c0_4] : memref<32x1xf32, #tpu.memory_space<vmem>>, vector<32x1xf32>
    %4 = vector.broadcast %3 : vector<32x1xf32> to vector<32x128xf32>
    %5 = arith.addf %2, %4 : vector<32x128xf32>
    %6 = arith.truncf %5 : vector<32x128xf32> to vector<32x128xbf16>
    %c0_5 = arith.constant 0 : index
    %c0_6 = arith.constant 0 : index
    %7 = vector.load %arg4[%c0_5, %c0_6] : memref<32x128xbf16, #tpu.memory_space<vmem>>, vector<32x128xbf16>
    tpu.vector_store %arg4[%c0_5, %c0_6], %6 {strides = array<i32>} : memref<32x128xbf16, #tpu.memory_space<vmem>>, vector<32x128xbf16>,
    return
  }
  func.func @transform_0(%arg0: i32) -> (i32, i32) {
    %c0_i32 = arith.constant 0 : i32
    %c0_i32_0 = arith.constant 0 : i32
    return %c0_i32, %arg0 : i32, i32
  }
  func.func @transform_1(%arg0: i32) -> (i32, i32) {
    %c0_i32 = arith.constant 0 : i32
    %c0_i32_0 = arith.constant 0 : i32
    %c0_i32_1 = arith.constant 0 : i32
    return %c0_i32, %c0_i32_0 : i32, i32
  }
  func.func @transform_2(%arg0: i32) -> (i32, i32) {
    %c0_i32 = arith.constant 0 : i32
    %c0_i32_0 = arith.constant 0 : i32
    %c0_i32_1 = arith.constant 0 : i32
    return %c0_i32, %c0_i32_0 : i32, i32
  }
  func.func @transform_3(%arg0: i32) -> (i32, i32) {
    %c0_i32 = arith.constant 0 : i32
    %c0_i32_0 = arith.constant 0 : i32
    return %c0_i32, %arg0 : i32, i32
  }
}

module attributes {stable_mosaic.version = 11 : i64} {
  func.func @_conv_stats_kernel(%arg0: i32, %arg1: memref<64x384xbf16, #tpu.memory_space<vmem>>, %arg2: memref<8x64xbf16, #tpu.memory_space<vmem>>, %arg3: memref<8x384xf32, #tpu.memory_space<vmem>>, %arg4: memref<8x1xf32, #tpu.memory_space<vmem>>, %arg5: memref<8x1xf32, #tpu.memory_space<vmem>>) attributes {dimension_semantics = [#tpu.dimension_semantics<arbitrary>], iteration_bounds = array<i64: 1>, scalar_prefetch = 0 : i64, scratch_operands = 0 : i64, tpu.core_type = #tpu.core_type<tc>, window_params = [{transform_indices = @transform_0, window_bounds = array<i64: 64, 384>}, {pipeline_mode = #tpu.pipeline_mode<synchronous>, transform_indices = @transform_1, window_bounds = array<i64: 8, 64>}, {transform_indices = @transform_2, window_bounds = array<i64: 8, 384>}, {pipeline_mode = #tpu.pipeline_mode<synchronous>, transform_indices = @transform_3, window_bounds = array<i64: 8, 1>}, {pipeline_mode = #tpu.pipeline_mode<synchronous>, transform_indices = @transform_4, window_bounds = array<i64: 8, 1>}]} {
    %c0 = arith.constant 0 : index
    %c0_0 = arith.constant 0 : index
    %0 = vector.load %arg2[%c0, %c0_0] : memref<8x64xbf16, #tpu.memory_space<vmem>>, vector<8x64xbf16>
    %c0_1 = arith.constant 0 : index
    %c0_2 = arith.constant 0 : index
    %1 = vector.load %arg1[%c0_1, %c0_2] : memref<64x384xbf16, #tpu.memory_space<vmem>>, vector<64x384xbf16>
    %cst = arith.constant dense<0.000000e+00> : vector<8x384xf32>
    %2 = tpu.matmul %0, %1, %cst {dimension_numbers = #tpu.dot_dimension_numbers<[1], [0], [0], [1], [0, 0, 1, 1], [], []>} : vector<8x64xbf16>, vector<64x384xbf16>, vector<8x384xf32> -> vector<8x384xf32>
    %c0_i32 = arith.constant 0 : i32
    %3 = arith.cmpi eq, %arg0, %c0_i32 : i32
    %4 = arith.extui %3 : i1 to i32
    %c0_i32_3 = arith.constant 0 : i32
    %5 = arith.cmpi ne, %4, %c0_i32_3 : i32
    scf.if %5 {
      %cst_16 = arith.constant 0.000000e+00 : f32
      %18 = vector.broadcast %cst_16 : f32 to vector<8x1xf32>
      %c0_17 = arith.constant 0 : index
      %c0_18 = arith.constant 0 : index
      %19 = vector.load %arg4[%c0_17, %c0_18] : memref<8x1xf32, #tpu.memory_space<vmem>>, vector<8x1xf32>
      tpu.vector_store %arg4[%c0_17, %c0_18], %18 {strides = array<i32>} : memref<8x1xf32, #tpu.memory_space<vmem>>, vector<8x1xf32>,
      %cst_19 = arith.constant 0.000000e+00 : f32
      %20 = vector.broadcast %cst_19 : f32 to vector<8x1xf32>
      %c0_20 = arith.constant 0 : index
      %c0_21 = arith.constant 0 : index
      %21 = vector.load %arg5[%c0_20, %c0_21] : memref<8x1xf32, #tpu.memory_space<vmem>>, vector<8x1xf32>
      tpu.vector_store %arg5[%c0_20, %c0_21], %20 {strides = array<i32>} : memref<8x1xf32, #tpu.memory_space<vmem>>, vector<8x1xf32>,
    } else {
    }
    %c0_4 = arith.constant 0 : index
    %c0_5 = arith.constant 0 : index
    %6 = vector.load %arg4[%c0_4, %c0_5] : memref<8x1xf32, #tpu.memory_space<vmem>>, vector<8x1xf32>
    %cst_6 = arith.constant dense<0.000000e+00> : vector<8xf32>
    %7 = vector.multi_reduction <add>, %2, %cst_6 [1] : vector<8x384xf32> to vector<8xf32>
    %8 = vector.shape_cast %7 : vector<8xf32> to vector<8x1xf32>
    %9 = arith.addf %6, %8 : vector<8x1xf32>
    %c0_7 = arith.constant 0 : index
    %c0_8 = arith.constant 0 : index
    %10 = vector.load %arg4[%c0_7, %c0_8] : memref<8x1xf32, #tpu.memory_space<vmem>>, vector<8x1xf32>
    tpu.vector_store %arg4[%c0_7, %c0_8], %9 {strides = array<i32>} : memref<8x1xf32, #tpu.memory_space<vmem>>, vector<8x1xf32>,
    %c0_9 = arith.constant 0 : index
    %c0_10 = arith.constant 0 : index
    %11 = vector.load %arg5[%c0_9, %c0_10] : memref<8x1xf32, #tpu.memory_space<vmem>>, vector<8x1xf32>
    %12 = arith.mulf %2, %2 : vector<8x384xf32>
    %cst_11 = arith.constant dense<0.000000e+00> : vector<8xf32>
    %13 = vector.multi_reduction <add>, %12, %cst_11 [1] : vector<8x384xf32> to vector<8xf32>
    %14 = vector.shape_cast %13 : vector<8xf32> to vector<8x1xf32>
    %15 = arith.addf %11, %14 : vector<8x1xf32>
    %c0_12 = arith.constant 0 : index
    %c0_13 = arith.constant 0 : index
    %16 = vector.load %arg5[%c0_12, %c0_13] : memref<8x1xf32, #tpu.memory_space<vmem>>, vector<8x1xf32>
    tpu.vector_store %arg5[%c0_12, %c0_13], %15 {strides = array<i32>} : memref<8x1xf32, #tpu.memory_space<vmem>>, vector<8x1xf32>,
    %c0_14 = arith.constant 0 : index
    %c0_15 = arith.constant 0 : index
    %17 = vector.load %arg3[%c0_14, %c0_15] : memref<8x384xf32, #tpu.memory_space<vmem>>, vector<8x384xf32>
    tpu.vector_store %arg3[%c0_14, %c0_15], %2 {strides = array<i32>} : memref<8x384xf32, #tpu.memory_space<vmem>>, vector<8x384xf32>,
    return
  }
  func.func @transform_0(%arg0: i32) -> (i32, i32) {
    %c0_i32 = arith.constant 0 : i32
    %c0_i32_0 = arith.constant 0 : i32
    return %c0_i32, %arg0 : i32, i32
  }
  func.func @transform_1(%arg0: i32) -> (i32, i32) {
    %c0_i32 = arith.constant 0 : i32
    %c0_i32_0 = arith.constant 0 : i32
    %c0_i32_1 = arith.constant 0 : i32
    return %c0_i32, %c0_i32_0 : i32, i32
  }
  func.func @transform_2(%arg0: i32) -> (i32, i32) {
    %c0_i32 = arith.constant 0 : i32
    %c0_i32_0 = arith.constant 0 : i32
    return %c0_i32, %arg0 : i32, i32
  }
  func.func @transform_3(%arg0: i32) -> (i32, i32) {
    %c0_i32 = arith.constant 0 : i32
    %c0_i32_0 = arith.constant 0 : i32
    %c0_i32_1 = arith.constant 0 : i32
    return %c0_i32, %c0_i32_0 : i32, i32
  }
  func.func @transform_4(%arg0: i32) -> (i32, i32) {
    %c0_i32 = arith.constant 0 : i32
    %c0_i32_0 = arith.constant 0 : i32
    %c0_i32_1 = arith.constant 0 : i32
    return %c0_i32, %c0_i32_0 : i32, i32
  }
}

module attributes {stable_mosaic.version = 11 : i64} {
  func.func @_bn_lrelu_kernel(%arg0: i32, %arg1: memref<8x384xf32, #tpu.memory_space<vmem>>, %arg2: memref<8x1xf32, #tpu.memory_space<vmem>>, %arg3: memref<8x1xf32, #tpu.memory_space<vmem>>, %arg4: memref<8x384xbf16, #tpu.memory_space<vmem>>) attributes {dimension_semantics = [#tpu.dimension_semantics<parallel>], iteration_bounds = array<i64: 1>, scalar_prefetch = 0 : i64, scratch_operands = 0 : i64, tpu.core_type = #tpu.core_type<tc>, window_params = [{transform_indices = @transform_0, window_bounds = array<i64: 8, 384>}, {pipeline_mode = #tpu.pipeline_mode<synchronous>, transform_indices = @transform_1, window_bounds = array<i64: 8, 1>}, {pipeline_mode = #tpu.pipeline_mode<synchronous>, transform_indices = @transform_2, window_bounds = array<i64: 8, 1>}, {transform_indices = @transform_3, window_bounds = array<i64: 8, 384>}]} {
    %c0 = arith.constant 0 : index
    %c0_0 = arith.constant 0 : index
    %0 = vector.load %arg1[%c0, %c0_0] : memref<8x384xf32, #tpu.memory_space<vmem>>, vector<8x384xf32>
    %c0_1 = arith.constant 0 : index
    %c0_2 = arith.constant 0 : index
    %1 = vector.load %arg2[%c0_1, %c0_2] : memref<8x1xf32, #tpu.memory_space<vmem>>, vector<8x1xf32>
    %2 = vector.broadcast %1 : vector<8x1xf32> to vector<8x384xf32>
    %3 = arith.mulf %0, %2 : vector<8x384xf32>
    %c0_3 = arith.constant 0 : index
    %c0_4 = arith.constant 0 : index
    %4 = vector.load %arg3[%c0_3, %c0_4] : memref<8x1xf32, #tpu.memory_space<vmem>>, vector<8x1xf32>
    %5 = vector.broadcast %4 : vector<8x1xf32> to vector<8x384xf32>
    %6 = arith.addf %3, %5 : vector<8x384xf32>
    %cst = arith.constant 0.000000e+00 : f32
    %7 = vector.broadcast %cst : f32 to vector<8x384xf32>
    %8 = arith.cmpf oge, %6, %7 : vector<8x384xf32>
    %cst_5 = arith.constant 2.000000e-01 : f32
    %9 = vector.broadcast %cst_5 : f32 to vector<8x384xf32>
    %10 = arith.mulf %9, %6 : vector<8x384xf32>
    %11 = arith.select %8, %6, %10 : vector<8x384xi1>, vector<8x384xf32>
    %12 = arith.truncf %11 : vector<8x384xf32> to vector<8x384xbf16>
    %c0_6 = arith.constant 0 : index
    %c0_7 = arith.constant 0 : index
    %13 = vector.load %arg4[%c0_6, %c0_7] : memref<8x384xbf16, #tpu.memory_space<vmem>>, vector<8x384xbf16>
    tpu.vector_store %arg4[%c0_6, %c0_7], %12 {strides = array<i32>} : memref<8x384xbf16, #tpu.memory_space<vmem>>, vector<8x384xbf16>,
    return
  }
  func.func @transform_0(%arg0: i32) -> (i32, i32) {
    %c0_i32 = arith.constant 0 : i32
    %c0_i32_0 = arith.constant 0 : i32
    return %c0_i32, %arg0 : i32, i32
  }
  func.func @transform_1(%arg0: i32) -> (i32, i32) {
    %c0_i32 = arith.constant 0 : i32
    %c0_i32_0 = arith.constant 0 : i32
    %c0_i32_1 = arith.constant 0 : i32
    return %c0_i32, %c0_i32_0 : i32, i32
  }
  func.func @transform_2(%arg0: i32) -> (i32, i32) {
    %c0_i32 = arith.constant 0 : i32
    %c0_i32_0 = arith.constant 0 : i32
    %c0_i32_1 = arith.constant 0 : i32
    return %c0_i32, %c0_i32_0 : i32, i32
  }
  func.func @transform_3(%arg0: i32) -> (i32, i32) {
    %c0_i32 = arith.constant 0 : i32
    %c0_i32_0 = arith.constant 0 : i32
    return %c0_i32, %arg0 : i32, i32
  }
}

module attributes {stable_mosaic.version = 11 : i64} {
  func.func @_bn_lrelu_kernel(%arg0: i32, %arg1: memref<8x384xf32, #tpu.memory_space<vmem>>, %arg2: memref<8x1xf32, #tpu.memory_space<vmem>>, %arg3: memref<8x1xf32, #tpu.memory_space<vmem>>, %arg4: memref<8x384xf32, #tpu.memory_space<vmem>>) attributes {dimension_semantics = [#tpu.dimension_semantics<parallel>], iteration_bounds = array<i64: 1>, scalar_prefetch = 0 : i64, scratch_operands = 0 : i64, tpu.core_type = #tpu.core_type<tc>, window_params = [{transform_indices = @transform_0, window_bounds = array<i64: 8, 384>}, {pipeline_mode = #tpu.pipeline_mode<synchronous>, transform_indices = @transform_1, window_bounds = array<i64: 8, 1>}, {pipeline_mode = #tpu.pipeline_mode<synchronous>, transform_indices = @transform_2, window_bounds = array<i64: 8, 1>}, {transform_indices = @transform_3, window_bounds = array<i64: 8, 384>}]} {
    %c0 = arith.constant 0 : index
    %c0_0 = arith.constant 0 : index
    %0 = vector.load %arg1[%c0, %c0_0] : memref<8x384xf32, #tpu.memory_space<vmem>>, vector<8x384xf32>
    %c0_1 = arith.constant 0 : index
    %c0_2 = arith.constant 0 : index
    %1 = vector.load %arg2[%c0_1, %c0_2] : memref<8x1xf32, #tpu.memory_space<vmem>>, vector<8x1xf32>
    %2 = vector.broadcast %1 : vector<8x1xf32> to vector<8x384xf32>
    %3 = arith.mulf %0, %2 : vector<8x384xf32>
    %c0_3 = arith.constant 0 : index
    %c0_4 = arith.constant 0 : index
    %4 = vector.load %arg3[%c0_3, %c0_4] : memref<8x1xf32, #tpu.memory_space<vmem>>, vector<8x1xf32>
    %5 = vector.broadcast %4 : vector<8x1xf32> to vector<8x384xf32>
    %6 = arith.addf %3, %5 : vector<8x384xf32>
    %cst = arith.constant 0.000000e+00 : f32
    %7 = vector.broadcast %cst : f32 to vector<8x384xf32>
    %8 = arith.cmpf oge, %6, %7 : vector<8x384xf32>
    %cst_5 = arith.constant 2.000000e-01 : f32
    %9 = vector.broadcast %cst_5 : f32 to vector<8x384xf32>
    %10 = arith.mulf %9, %6 : vector<8x384xf32>
    %11 = arith.select %8, %6, %10 : vector<8x384xi1>, vector<8x384xf32>
    %c0_6 = arith.constant 0 : index
    %c0_7 = arith.constant 0 : index
    %12 = vector.load %arg4[%c0_6, %c0_7] : memref<8x384xf32, #tpu.memory_space<vmem>>, vector<8x384xf32>
    tpu.vector_store %arg4[%c0_6, %c0_7], %11 {strides = array<i32>} : memref<8x384xf32, #tpu.memory_space<vmem>>, vector<8x384xf32>,
    return
  }
  func.func @transform_0(%arg0: i32) -> (i32, i32) {
    %c0_i32 = arith.constant 0 : i32
    %c0_i32_0 = arith.constant 0 : i32
    return %c0_i32, %arg0 : i32, i32
  }
  func.func @transform_1(%arg0: i32) -> (i32, i32) {
    %c0_i32 = arith.constant 0 : i32
    %c0_i32_0 = arith.constant 0 : i32
    %c0_i32_1 = arith.constant 0 : i32
    return %c0_i32, %c0_i32_0 : i32, i32
  }
  func.func @transform_2(%arg0: i32) -> (i32, i32) {
    %c0_i32 = arith.constant 0 : i32
    %c0_i32_0 = arith.constant 0 : i32
    %c0_i32_1 = arith.constant 0 : i32
    return %c0_i32, %c0_i32_0 : i32, i32
  }
  func.func @transform_3(%arg0: i32) -> (i32, i32) {
    %c0_i32 = arith.constant 0 : i32
    %c0_i32_0 = arith.constant 0 : i32
    return %c0_i32, %arg0 : i32, i32
  }
}

module attributes {stable_mosaic.version = 11 : i64} {
  func.func @_conv_stats_kernel(%arg0: i32, %arg1: memref<32x384xbf16, #tpu.memory_space<vmem>>, %arg2: memref<8x32xbf16, #tpu.memory_space<vmem>>, %arg3: memref<8x384xf32, #tpu.memory_space<vmem>>, %arg4: memref<8x1xf32, #tpu.memory_space<vmem>>, %arg5: memref<8x1xf32, #tpu.memory_space<vmem>>) attributes {dimension_semantics = [#tpu.dimension_semantics<arbitrary>], iteration_bounds = array<i64: 1>, scalar_prefetch = 0 : i64, scratch_operands = 0 : i64, tpu.core_type = #tpu.core_type<tc>, window_params = [{transform_indices = @transform_0, window_bounds = array<i64: 32, 384>}, {pipeline_mode = #tpu.pipeline_mode<synchronous>, transform_indices = @transform_1, window_bounds = array<i64: 8, 32>}, {transform_indices = @transform_2, window_bounds = array<i64: 8, 384>}, {pipeline_mode = #tpu.pipeline_mode<synchronous>, transform_indices = @transform_3, window_bounds = array<i64: 8, 1>}, {pipeline_mode = #tpu.pipeline_mode<synchronous>, transform_indices = @transform_4, window_bounds = array<i64: 8, 1>}]} {
    %c0 = arith.constant 0 : index
    %c0_0 = arith.constant 0 : index
    %0 = vector.load %arg2[%c0, %c0_0] : memref<8x32xbf16, #tpu.memory_space<vmem>>, vector<8x32xbf16>
    %c0_1 = arith.constant 0 : index
    %c0_2 = arith.constant 0 : index
    %1 = vector.load %arg1[%c0_1, %c0_2] : memref<32x384xbf16, #tpu.memory_space<vmem>>, vector<32x384xbf16>
    %cst = arith.constant dense<0.000000e+00> : vector<8x384xf32>
    %2 = tpu.matmul %0, %1, %cst {dimension_numbers = #tpu.dot_dimension_numbers<[1], [0], [0], [1], [0, 0, 1, 1], [], []>} : vector<8x32xbf16>, vector<32x384xbf16>, vector<8x384xf32> -> vector<8x384xf32>
    %c0_i32 = arith.constant 0 : i32
    %3 = arith.cmpi eq, %arg0, %c0_i32 : i32
    %4 = arith.extui %3 : i1 to i32
    %c0_i32_3 = arith.constant 0 : i32
    %5 = arith.cmpi ne, %4, %c0_i32_3 : i32
    scf.if %5 {
      %cst_16 = arith.constant 0.000000e+00 : f32
      %18 = vector.broadcast %cst_16 : f32 to vector<8x1xf32>
      %c0_17 = arith.constant 0 : index
      %c0_18 = arith.constant 0 : index
      %19 = vector.load %arg4[%c0_17, %c0_18] : memref<8x1xf32, #tpu.memory_space<vmem>>, vector<8x1xf32>
      tpu.vector_store %arg4[%c0_17, %c0_18], %18 {strides = array<i32>} : memref<8x1xf32, #tpu.memory_space<vmem>>, vector<8x1xf32>,
      %cst_19 = arith.constant 0.000000e+00 : f32
      %20 = vector.broadcast %cst_19 : f32 to vector<8x1xf32>
      %c0_20 = arith.constant 0 : index
      %c0_21 = arith.constant 0 : index
      %21 = vector.load %arg5[%c0_20, %c0_21] : memref<8x1xf32, #tpu.memory_space<vmem>>, vector<8x1xf32>
      tpu.vector_store %arg5[%c0_20, %c0_21], %20 {strides = array<i32>} : memref<8x1xf32, #tpu.memory_space<vmem>>, vector<8x1xf32>,
    } else {
    }
    %c0_4 = arith.constant 0 : index
    %c0_5 = arith.constant 0 : index
    %6 = vector.load %arg4[%c0_4, %c0_5] : memref<8x1xf32, #tpu.memory_space<vmem>>, vector<8x1xf32>
    %cst_6 = arith.constant dense<0.000000e+00> : vector<8xf32>
    %7 = vector.multi_reduction <add>, %2, %cst_6 [1] : vector<8x384xf32> to vector<8xf32>
    %8 = vector.shape_cast %7 : vector<8xf32> to vector<8x1xf32>
    %9 = arith.addf %6, %8 : vector<8x1xf32>
    %c0_7 = arith.constant 0 : index
    %c0_8 = arith.constant 0 : index
    %10 = vector.load %arg4[%c0_7, %c0_8] : memref<8x1xf32, #tpu.memory_space<vmem>>, vector<8x1xf32>
    tpu.vector_store %arg4[%c0_7, %c0_8], %9 {strides = array<i32>} : memref<8x1xf32, #tpu.memory_space<vmem>>, vector<8x1xf32>,
    %c0_9 = arith.constant 0 : index
    %c0_10 = arith.constant 0 : index
    %11 = vector.load %arg5[%c0_9, %c0_10] : memref<8x1xf32, #tpu.memory_space<vmem>>, vector<8x1xf32>
    %12 = arith.mulf %2, %2 : vector<8x384xf32>
    %cst_11 = arith.constant dense<0.000000e+00> : vector<8xf32>
    %13 = vector.multi_reduction <add>, %12, %cst_11 [1] : vector<8x384xf32> to vector<8xf32>
    %14 = vector.shape_cast %13 : vector<8xf32> to vector<8x1xf32>
    %15 = arith.addf %11, %14 : vector<8x1xf32>
    %c0_12 = arith.constant 0 : index
    %c0_13 = arith.constant 0 : index
    %16 = vector.load %arg5[%c0_12, %c0_13] : memref<8x1xf32, #tpu.memory_space<vmem>>, vector<8x1xf32>
    tpu.vector_store %arg5[%c0_12, %c0_13], %15 {strides = array<i32>} : memref<8x1xf32, #tpu.memory_space<vmem>>, vector<8x1xf32>,
    %c0_14 = arith.constant 0 : index
    %c0_15 = arith.constant 0 : index
    %17 = vector.load %arg3[%c0_14, %c0_15] : memref<8x384xf32, #tpu.memory_space<vmem>>, vector<8x384xf32>
    tpu.vector_store %arg3[%c0_14, %c0_15], %2 {strides = array<i32>} : memref<8x384xf32, #tpu.memory_space<vmem>>, vector<8x384xf32>,
    return
  }
  func.func @transform_0(%arg0: i32) -> (i32, i32) {
    %c0_i32 = arith.constant 0 : i32
    %c0_i32_0 = arith.constant 0 : i32
    return %c0_i32, %arg0 : i32, i32
  }
  func.func @transform_1(%arg0: i32) -> (i32, i32) {
    %c0_i32 = arith.constant 0 : i32
    %c0_i32_0 = arith.constant 0 : i32
    %c0_i32_1 = arith.constant 0 : i32
    return %c0_i32, %c0_i32_0 : i32, i32
  }
  func.func @transform_2(%arg0: i32) -> (i32, i32) {
    %c0_i32 = arith.constant 0 : i32
    %c0_i32_0 = arith.constant 0 : i32
    return %c0_i32, %arg0 : i32, i32
  }
  func.func @transform_3(%arg0: i32) -> (i32, i32) {
    %c0_i32 = arith.constant 0 : i32
    %c0_i32_0 = arith.constant 0 : i32
    %c0_i32_1 = arith.constant 0 : i32
    return %c0_i32, %c0_i32_0 : i32, i32
  }
  func.func @transform_4(%arg0: i32) -> (i32, i32) {
    %c0_i32 = arith.constant 0 : i32
    %c0_i32_0 = arith.constant 0 : i32
    %c0_i32_1 = arith.constant 0 : i32
    return %c0_i32, %c0_i32_0 : i32, i32
  }
}

</mosaic_0001>

<bundles_post_ra>
// kernel: _pallas_forward.5
= control target key start
LH: loop header
LB: loop body
LE: loop exit
PB: predicated region body
PF: predicated region fallthrough
CT: control target
= control target key end

     0   :  { %v131_v2 = vmov 0   ;;  %vm61_vm0 = vcmask 130048   ;;  %s179_s0 = inlined_call_operand.vmem [shape: bf16[16,128], index: 0, kind: input, shape index: {}]   ;;  %s180_s1 = inlined_call_operand.vmem [shape: bf16[32,16], index: 1, kind: input, shape index: {}]   ;;  %s181_s2 = inlined_call_operand.vmem [shape: f32[32,1], index: 2, kind: input, shape index: {}]   ;;  %s182_s3 = inlined_call_operand.vmem [shape: bf16[32,128], index: 3, kind: output, shape index: {}]  }
   0x1   :  { %v115_v0 = vld [vmem:[%s179_s0] sm:$0xff]  ;;  %130 = vset.pattern.permute.xlu1 %v131_v2  ;;  %129 = vset.pattern.permute.xlu0 %v131_v2  ;;  %v114_v3 = vld [vmem:[%s180_s1 + $0x8] sm:$0xff]  ;;  %v23_v4 = vld [vmem:[%s181_s2 + $0x10] sm:$0xff] }
   0x2   :  { %v113_v1 = vld [vmem:[%s180_s1] sm:$0xff]  ;;  %75 = vmatpush.bf16.msra.mxu0 %v115_v0  ;;  %127 = vmatpush.bf16.msra.mxu1 %v115_v0  ;;  %v24_v6 = vld [vmem:[%s181_s2 + $0x18] sm:$0xff]  ;;  %v22_v7 = vld [vmem:[%s181_s2 + $0x8] sm:$0xff] }
   0x3   :  { %v21_v5 = vld [vmem:[%s181_s2] sm:$0xff]  ;;  %37 = vperm.xlu1 %130, %v23_v4  }
   0x4   :  { %27 = vperm.xlu0 %129, %v21_v5  }
   0x5   :  { %111 = vmatmul.msk.bf16.vlgmr.msra.gmra.mxu0 %vm61_vm0, %v113_v1  ;;  %112 = vmatmul.msk.bf16.vlgmr.msra.gmra.mxu1 %vm61_vm0, %v114_v3 }
   0xb   :  { %42 = vperm.xlu1 %130, %v24_v6  }
   0xc   :  { %32 = vperm.xlu0 %129, %v22_v7  }
  0x75   :  { %v38_v8 = vpop.permute.xlu1 %37 }
  0x76   :  { %v28_v9 = vpop.permute.xlu0 %27 }
  0x7d   :  { %v43_v12 = vpop.permute.xlu1 %42 }
  0x7e   :  { %v33_v13 = vpop.permute.xlu0 %32 }
  0x82   :  { %v77_v10 = vpop.f32.mrf.mxu0  ;;  %v82_v11 = vpop.f32.mrf.mxu1 }
  0x83   :  { %v78_v16 = vadd.f32 %v77_v10, %v28_v9  ;;  %v83_v17 = vadd.f32 %v82_v11, %v38_v8 }
  0x8a   :  { %v79_v14 = vpop.f32.mrf.mxu0  ;;  %v84_v15 = vpop.f32.mrf.mxu1 }
  0x8b   :  { %v80_v18 = vadd.f32 %v79_v14, %v33_v13  ;;  %v85_v19 = vadd.f32 %v84_v15, %v43_v12 }
  0x8d   :  { %v119_v20 = vpack.c.bf16 %v80_v18, %v78_v16  ;;  %v124_v21 = vpack.c.bf16 %v85_v19, %v83_v17 }
  0x8f   :  { %120 = vst [vmem:[%s182_s3] sm:$0xff] %v119_v20  }
  0x90   :  { %126 = vst [vmem:[%s182_s3 + $0x8] sm:$0xff] %v124_v21  }

// kernel: _pallas_forward.6
= control target key start
LH: loop header
LB: loop body
LE: loop exit
PB: predicated region body
PF: predicated region fallthrough
CT: control target
= control target key end

     0   :  { %vm96_vm0 = vcmask 523264   ;;  %vm143_vm1 = vcmask 7168   ;;  %v243_v37 = vmov 0.0   ;;  %s375_s0 = inlined_call_operand.vmem [shape: bf16[64,384], index: 0, kind: input, shape index: {}]   ;;  %s376_s1 = inlined_call_operand.vmem [shape: bf16[8,64], index: 1, kind: input, shape index: {}]   ;;  %s377_s3 = inlined_call_operand.vmem [shape: f32[8,1], index: 3, kind: output, shape index: {1}]   ;;  %s378_s4 = inlined_call_operand.vmem [shape: f32[8,1], index: 4, kind: output, shape index: {2}]   ;;  %s379_s2 = inlined_call_operand.vmem [shape: f32[8,384], index: 2, kind: output, shape index: {0}]  }
   0x1   :  { %v217_v0 = vld [vmem:[%s375_s0 + $0x48] sm:$0xf]  ;;  %v240_v1 = vld [vmem:[%s375_s0 + $0x50] sm:$0xf0]  ;;  %v239_v2 = vld [vmem:[%s375_s0 + $0x4c] sm:$0xf] }
   0x2   :  { %v218_v3 = vor.u32 %v240_v1, %v217_v0  ;;  %v219_v4 = vld [vmem:[%s375_s0 + $0x54] sm:$0xf0]  ;;  %v225_v5 = vld [vmem:[%s375_s0 + $0x50] sm:$0xf]  ;;  %v241_v6 = vld [vmem:[%s375_s0 + $0x58] sm:$0xf0] }
   0x3   :  { %v222_v7 = vor.u32 %v239_v2, %v219_v4  ;;  %v226_v8 = vor.u32 %v241_v6, %v225_v5  ;;  %v205_v9 = vld [vmem:[%s375_s0 + $0x30] sm:$0xf]  ;;  %v237_v10 = vld [vmem:[%s375_s0 + $0x38] sm:$0xf0]  ;;  %v236_v11 = vld [vmem:[%s375_s0 + $0x34] sm:$0xf] }
   0x4   :  { %104 = vmatpush.bf16.msra.mxu0 %v218_v3  ;;  %v206_v12 = vor.u32 %v237_v10, %v205_v9  ;;  %v207_v13 = vld [vmem:[%s375_s0 + $0x3c] sm:$0xf0]  ;;  %v213_v14 = vld [vmem:[%s375_s0 + $0x38] sm:$0xf]  ;;  %v238_v15 = vld [vmem:[%s375_s0 + $0x40] sm:$0xf0] }
   0x5   :  { %117 = vmatpush.bf16.msra.mxu1 %v222_v7  ;;  %130 = vmatpush.bf16.msra.mxu2 %v226_v8  ;;  %v210_v16 = vor.u32 %v236_v11, %v207_v13  ;;  %v214_v17 = vor.u32 %v238_v15, %v213_v14  ;;  %v193_v18 = vld [vmem:[%s375_s0 + $0x18] sm:$0xf]  ;;  %v234_v19 = vld [vmem:[%s375_s0 + $0x20] sm:$0xf0]  ;;  %v233_v20 = vld [vmem:[%s375_s0 + $0x1c] sm:$0xf] }
   0x6   :  { %v195_v21 = vld [vmem:[%s375_s0 + $0x24] sm:$0xf0]  ;;  %v201_v22 = vld [vmem:[%s375_s0 + $0x20] sm:$0xf]  ;;  %v235_v23 = vld [vmem:[%s375_s0 + $0x28] sm:$0xf0]  ;;  %v194_v24 = vor.u32 %v234_v19, %v193_v18 }
   0x7   :  { %v198_v25 = vor.u32 %v233_v20, %v195_v21  ;;  %v202_v26 = vor.u32 %v235_v23, %v201_v22  ;;  %v181_v27 = vld [vmem:[%s375_s0] sm:$0xf]  ;;  %v231_v28 = vld [vmem:[%s375_s0 + $0x8] sm:$0xf0]  ;;  %v230_v29 = vld [vmem:[%s375_s0 + $0x4] sm:$0xf] }
   0x8   :  { %105 = vmatpush.bf16.msra.mxu0 %v206_v12  ;;  %v183_v30 = vld [vmem:[%s375_s0 + $0xc] sm:$0xf0]  ;;  %v189_v31 = vld [vmem:[%s375_s0 + $0x8] sm:$0xf]  ;;  %v232_v32 = vld [vmem:[%s375_s0 + $0x10] sm:$0xf0]  ;;  %v182_v33 = vor.u32 %v231_v28, %v181_v27 }
   0x9   :  { %118 = vmatpush.bf16.msra.mxu1 %v210_v16  ;;  %131 = vmatpush.bf16.msra.mxu2 %v214_v17  ;;  %v186_v34 = vor.u32 %v230_v29, %v183_v30  ;;  %v190_v35 = vor.u32 %v232_v32, %v189_v31  ;;  %v15_v36 = vld [vmem:[%s376_s1] sm:$0xf]  ;;  %144 = vst.msk [vmem:[%s377_s3] sm:$0xff] %vm143_vm1, %v243_v37 }
   0xa   :  { %145 = vst.msk [vmem:[%s378_s4] sm:$0xff] %vm143_vm1, %v243_v37 }
   0xc   :  { %106 = vmatpush.bf16.msra.mxu0 %v194_v24 }
   0xd   :  { %119 = vmatpush.bf16.msra.mxu1 %v198_v25  ;;  %132 = vmatpush.bf16.msra.mxu2 %v202_v26 }
  0x10   :  { %107 = vmatpush.bf16.msra.mxu0 %v182_v33  ;;  %v146_v51 = vld [vmem:[%s377_s3] sm:$0xff] }
  0x11   :  { %120 = vmatpush.bf16.msra.mxu1 %v186_v34  ;;  %133 = vmatpush.bf16.msra.mxu2 %v190_v35  ;;  %v154_v54 = vld [vmem:[%s378_s4] sm:$0xff] }
  0x13   :  { %227 = vmatmul.msk.bf16.vlgmr.msra.gmra.mxu0 %vm96_vm0, %v15_v36 }
  0x14   :  { %228 = vmatmul.msk.bf16.vlgmr.msra.gmra.mxu1 %vm96_vm0, %v15_v36  ;;  %229 = vmatmul.msk.bf16.vlgmr.msra.gmra.mxu2 %vm96_vm0, %v15_v36 }
  0x90   :  { %v109_v38 = vpop.f32.mrf.mxu0 }
  0x91   :  { %164 = vst [vmem:[%s379_s2] sm:$0xff] %v109_v38  ;;  %v122_v39 = vpop.f32.mrf.mxu1  ;;  %v155_v42 = vmul.f32 %v109_v38, %v109_v38 }
  0x92   :  { %165 = vst [vmem:[%s379_s2 + $0x8] sm:$0xff] %v122_v39  ;;  %v147_v40 = vadd.f32 %v122_v39, %v109_v38  ;;  %v156_v43 = vmul.f32 %v122_v39, %v122_v39 }
  0x94   :  { %v158_v48 = vadd.f32 %v156_v43, %v155_v42 }
  0x97   :  { %v135_v41 = vpop.f32.mrf.mxu2 }
  0x98   :  { %166 = vst [vmem:[%s379_s2 + $0x10] sm:$0xff] %v135_v41  ;;  %v111_v44 = vpop.f32.mrf.mxu0  ;;  %v148_v45 = vadd.f32 %v147_v40, %v135_v41  ;;  %v157_v47 = vmul.f32 %v135_v41, %v135_v41 }
  0x99   :  { %v124_v46 = vpop.f32.mrf.mxu1 }
  0x9a   :  { %149 = vadd.xlane.f32.xlu0 %v148_v45  ;;  %v159_v50 = vadd.f32 %v158_v48, %v157_v47 }
  0x9f   :  { %v137_v49 = vpop.f32.mrf.mxu2 }
  0xa2   :  { %160 = vadd.xlane.f32.xlu0 %v159_v50 }
 0x10d   :  { %v150_v52 = vpop.xlane.xlu0 %149 }
 0x10e   :  { %v151_v53 = vadd.f32 %v150_v52, %v146_v51 }
 0x110   :  { %153 = vst.msk [vmem:[%s377_s3] sm:$0xff] %vm143_vm1, %v151_v53 }
 0x115   :  { %v161_v55 = vpop.xlane.xlu0 %160 }
 0x116   :  { %v162_v56 = vadd.f32 %v161_v55, %v154_v54 }
 0x118   :  { %163 = vst.msk [vmem:[%s378_s4] sm:$0xff] %vm143_vm1, %v162_v56 }

// kernel: _pallas_forward.7
= control target key start
LH: loop header
LB: loop body
LE: loop exit
PB: predicated region body
PF: predicated region fallthrough
CT: control target
= control target key end

     0   :  { %v54_v0 = vmov 0   ;;  %s96_s1 = inlined_call_operand.vmem [shape: f32[8,1], index: 1, kind: input, shape index: {}]   ;;  %s97_s2 = inlined_call_operand.vmem [shape: f32[8,1], index: 2, kind: input, shape index: {}]   ;;  %s98_s0 = inlined_call_operand.vmem [shape: f32[8,384], index: 0, kind: input, shape index: {}]   ;;  %s99_s3 = inlined_call_operand.vmem [shape: bf16[8,384], index: 3, kind: output, shape index: {}]  }
   0x1   :  { %53 = vset.pattern.permute.xlu0 %v54_v0  ;;  %v17_v1 = vld [vmem:[%s96_s1] sm:$0xff]  ;;  %v15_v5 = vld [vmem:[%s98_s0 + $0x8] sm:$0xff]  ;;  %v16_v6 = vld [vmem:[%s98_s0 + $0x10] sm:$0xff] }
   0x2   :  { %20 = vperm.xlu0 %53, %v17_v1   ;;  %v26_v2 = vld [vmem:[%s97_s2] sm:$0xff] }
   0x3   :  { %v14_v4 = vld [vmem:[%s98_s0] sm:$0xff] }
   0xa   :  { %29 = vperm.xlu0 %53, %v26_v2  }
  0x74   :  { %v21_v3 = vpop.permute.xlu0 %20 }
  0x75   :  { %v23_v7 = vmul.f32 %v21_v3, %v14_v4  ;;  %v24_v8 = vmul.f32 %v21_v3, %v15_v5  ;;  %v25_v9 = vmul.f32 %v21_v3, %v16_v6 }
  0x7c   :  { %v30_v10 = vpop.permute.xlu0 %29 }
  0x7d   :  { %v32_v11 = vadd.f32 %v30_v10, %v23_v7  ;;  %v33_v12 = vadd.f32 %v30_v10, %v24_v8  ;;  %v34_v13 = vadd.f32 %v30_v10, %v25_v9 }
  0x7f   :  { %vm35_vm0 = vcmp.ge.f32.partialorder %v32_v11, 0.0  ;;  %vm36_vm1 = vcmp.ge.f32.partialorder %v33_v12, 0.0  ;;  %vm37_vm2 = vcmp.ge.f32.partialorder %v34_v13, 0.0  ;;  %v38_v14 = vmul.f32 0.2, %v32_v11 }
  0x80   :  { %v39_v15 = vmul.f32 0.2, %v33_v12  ;;  %v40_v16 = vmul.f32 0.2, %v34_v13 }
  0x81   :  { %v41_v17 = vsel %vm35_vm0, %v32_v11, %v38_v14 }
  0x82   :  { %v42_v18 = vsel %vm36_vm1, %v33_v12, %v39_v15  ;;  %v43_v19 = vsel %vm37_vm2, %v34_v13, %v40_v16 }
  0x83   :  { %v44_v20 = vpack.c.bf16 %v42_v18, %v41_v17  ;;  %v45_v21 = vpack.c.bf16 %v43_v19, %v43_v19 }
  0x85   :  { %46 = vst [vmem:[%s99_s3] sm:$0xff] %v44_v20 }
  0x86   :  { %47 = vst [vmem:[%s99_s3 + $0x8] sm:$0xf] %v45_v21 }

// kernel: _pallas_forward.9
= control target key start
LH: loop header
LB: loop body
LE: loop exit
PB: predicated region body
PF: predicated region fallthrough
CT: control target
= control target key end

     0   :  { %v53_v0 = vmov 0   ;;  %s98_s1 = inlined_call_operand.vmem [shape: f32[8,1], index: 1, kind: input, shape index: {}]   ;;  %s99_s2 = inlined_call_operand.vmem [shape: f32[8,1], index: 2, kind: input, shape index: {}]   ;;  %s100_s0 = inlined_call_operand.vmem [shape: f32[8,384], index: 0, kind: input, shape index: {}]   ;;  %s101_s3 = inlined_call_operand.vmem [shape: f32[8,384], index: 3, kind: output, shape index: {}]  }
   0x1   :  { %52 = vset.pattern.permute.xlu0 %v53_v0  ;;  %v17_v1 = vld [vmem:[%s98_s1] sm:$0xff]  ;;  %v15_v5 = vld [vmem:[%s100_s0 + $0x8] sm:$0xff]  ;;  %v16_v6 = vld [vmem:[%s100_s0 + $0x10] sm:$0xff] }
   0x2   :  { %20 = vperm.xlu0 %52, %v17_v1   ;;  %v26_v2 = vld [vmem:[%s99_s2] sm:$0xff] }
   0x3   :  { %v14_v4 = vld [vmem:[%s100_s0] sm:$0xff] }
   0xa   :  { %29 = vperm.xlu0 %52, %v26_v2  }
  0x74   :  { %v21_v3 = vpop.permute.xlu0 %20 }
  0x75   :  { %v23_v7 = vmul.f32 %v21_v3, %v14_v4  ;;  %v24_v8 = vmul.f32 %v21_v3, %v15_v5  ;;  %v25_v9 = vmul.f32 %v21_v3, %v16_v6 }
  0x7c   :  { %v30_v10 = vpop.permute.xlu0 %29 }
  0x7d   :  { %v32_v11 = vadd.f32 %v30_v10, %v23_v7  ;;  %v33_v12 = vadd.f32 %v30_v10, %v24_v8  ;;  %v34_v13 = vadd.f32 %v30_v10, %v25_v9 }
  0x7f   :  { %vm35_vm0 = vcmp.ge.f32.partialorder %v32_v11, 0.0  ;;  %vm36_vm1 = vcmp.ge.f32.partialorder %v33_v12, 0.0  ;;  %vm37_vm2 = vcmp.ge.f32.partialorder %v34_v13, 0.0  ;;  %v38_v14 = vmul.f32 0.2, %v32_v11 }
  0x80   :  { %v39_v15 = vmul.f32 0.2, %v33_v12  ;;  %v40_v16 = vmul.f32 0.2, %v34_v13 }
  0x81   :  { %v41_v17 = vsel %vm35_vm0, %v32_v11, %v38_v14 }
  0x82   :  { %v42_v18 = vsel %vm36_vm1, %v33_v12, %v39_v15  ;;  %v43_v19 = vsel %vm37_vm2, %v34_v13, %v40_v16  ;;  %44 = vst [vmem:[%s101_s3] sm:$0xff] %v41_v17 }
  0x83   :  { %45 = vst [vmem:[%s101_s3 + $0x8] sm:$0xff] %v42_v18 }
  0x84   :  { %46 = vst [vmem:[%s101_s3 + $0x10] sm:$0xff] %v43_v19 }

// kernel: _pallas_forward.8
= control target key start
LH: loop header
LB: loop body
LE: loop exit
PB: predicated region body
PF: predicated region fallthrough
CT: control target
= control target key end

     0   :  { %vm56_vm0 = vcmask 261120   ;;  %vm103_vm1 = vcmask 7168   ;;  %v173_v19 = vmov 0.0   ;;  %s269_s0 = inlined_call_operand.vmem [shape: bf16[32,384], index: 0, kind: input, shape index: {}]   ;;  %s270_s1 = inlined_call_operand.vmem [shape: bf16[8,32], index: 1, kind: input, shape index: {}]   ;;  %s271_s3 = inlined_call_operand.vmem [shape: f32[8,1], index: 3, kind: output, shape index: {1}]   ;;  %s272_s4 = inlined_call_operand.vmem [shape: f32[8,1], index: 4, kind: output, shape index: {2}]   ;;  %s273_s2 = inlined_call_operand.vmem [shape: f32[8,384], index: 2, kind: output, shape index: {0}]  }
   0x1   :  { %v153_v0 = vld [vmem:[%s269_s0 + $0x18] sm:$0xf]  ;;  %v170_v1 = vld [vmem:[%s269_s0 + $0x20] sm:$0xf0]  ;;  %v169_v2 = vld [vmem:[%s269_s0 + $0x1c] sm:$0xf] }
   0x2   :  { %v154_v3 = vor.u32 %v170_v1, %v153_v0  ;;  %v155_v4 = vld [vmem:[%s269_s0 + $0x24] sm:$0xf0]  ;;  %v161_v5 = vld [vmem:[%s269_s0 + $0x20] sm:$0xf]  ;;  %v171_v6 = vld [vmem:[%s269_s0 + $0x28] sm:$0xf0] }
   0x3   :  { %v158_v7 = vor.u32 %v169_v2, %v155_v4  ;;  %v162_v8 = vor.u32 %v171_v6, %v161_v5  ;;  %v141_v9 = vld [vmem:[%s269_s0] sm:$0xf]  ;;  %v167_v10 = vld [vmem:[%s269_s0 + $0x8] sm:$0xf0]  ;;  %v166_v11 = vld [vmem:[%s269_s0 + $0x4] sm:$0xf] }
   0x4   :  { %66 = vmatpush.bf16.msra.mxu0 %v154_v3  ;;  %v142_v12 = vor.u32 %v167_v10, %v141_v9  ;;  %v143_v13 = vld [vmem:[%s269_s0 + $0xc] sm:$0xf0]  ;;  %v149_v14 = vld [vmem:[%s269_s0 + $0x8] sm:$0xf]  ;;  %v168_v15 = vld [vmem:[%s269_s0 + $0x10] sm:$0xf0] }
   0x5   :  { %79 = vmatpush.bf16.msra.mxu1 %v158_v7  ;;  %92 = vmatpush.bf16.msra.mxu2 %v162_v8  ;;  %v146_v16 = vor.u32 %v166_v11, %v143_v13  ;;  %v150_v17 = vor.u32 %v168_v15, %v149_v14  ;;  %v15_v18 = vld [vmem:[%s270_s1] sm:$0xf]  ;;  %104 = vst.msk [vmem:[%s271_s3] sm:$0xff] %vm103_vm1, %v173_v19 }
   0x6   :  { %105 = vst.msk [vmem:[%s272_s4] sm:$0xff] %vm103_vm1, %v173_v19 }
   0x8   :  { %67 = vmatpush.bf16.msra.mxu0 %v142_v12 }
   0x9   :  { %80 = vmatpush.bf16.msra.mxu1 %v146_v16  ;;  %93 = vmatpush.bf16.msra.mxu2 %v150_v17 }
   0xb   :  { %163 = vmatmul.msk.bf16.vlgmr.msra.gmra.mxu0 %vm56_vm0, %v15_v18 }
   0xc   :  { %164 = vmatmul.msk.bf16.vlgmr.msra.gmra.mxu1 %vm56_vm0, %v15_v18  ;;  %165 = vmatmul.msk.bf16.vlgmr.msra.gmra.mxu2 %vm56_vm0, %v15_v18  ;;  %v106_v33 = vld [vmem:[%s271_s3] sm:$0xff] }
   0xd   :  { %v114_v36 = vld [vmem:[%s272_s4] sm:$0xff] }
  0x88   :  { %v69_v20 = vpop.f32.mrf.mxu0 }
  0x89   :  { %124 = vst [vmem:[%s273_s2] sm:$0xff] %v69_v20  ;;  %v82_v21 = vpop.f32.mrf.mxu1  ;;  %v115_v24 = vmul.f32 %v69_v20, %v69_v20 }
  0x8a   :  { %125 = vst [vmem:[%s273_s2 + $0x8] sm:$0xff] %v82_v21  ;;  %v107_v22 = vadd.f32 %v82_v21, %v69_v20  ;;  %v116_v25 = vmul.f32 %v82_v21, %v82_v21 }
  0x8c   :  { %v118_v30 = vadd.f32 %v116_v25, %v115_v24 }
  0x8f   :  { %v95_v23 = vpop.f32.mrf.mxu2 }
  0x90   :  { %126 = vst [vmem:[%s273_s2 + $0x10] sm:$0xff] %v95_v23  ;;  %v71_v26 = vpop.f32.mrf.mxu0  ;;  %v108_v27 = vadd.f32 %v107_v22, %v95_v23  ;;  %v117_v29 = vmul.f32 %v95_v23, %v95_v23 }
  0x91   :  { %v84_v28 = vpop.f32.mrf.mxu1 }
  0x92   :  { %109 = vadd.xlane.f32.xlu0 %v108_v27  ;;  %v119_v32 = vadd.f32 %v118_v30, %v117_v29 }
  0x97   :  { %v97_v31 = vpop.f32.mrf.mxu2 }
  0x9a   :  { %120 = vadd.xlane.f32.xlu0 %v119_v32 }
 0x105   :  { %v110_v34 = vpop.xlane.xlu0 %109 }
 0x106   :  { %v111_v35 = vadd.f32 %v110_v34, %v106_v33 }
 0x108   :  { %113 = vst.msk [vmem:[%s271_s3] sm:$0xff] %vm103_vm1, %v111_v35 }
 0x10d   :  { %v121_v37 = vpop.xlane.xlu0 %120 }
 0x10e   :  { %v122_v38 = vadd.f32 %v121_v37, %v114_v36 }
 0x110   :  { %123 = vst.msk [vmem:[%s272_s4] sm:$0xff] %vm103_vm1, %v122_v38 }

</bundles_post_ra>
